<compile_context>
chip_gen: v5e
topology: v5e:2x2
jax: 0.10.0
libtpu: 0.0.40
codegen_flags: <defaults>
</compile_context>

<pallas_src>
import jax
import jax.numpy as jnp
from jax import lax
from jax.experimental import pallas as pl
from jax.experimental.pallas import tpu as pltpu


def resblock_kernel(x_ref, w1_ref, b1_ref, w2_ref, b2_ref, o_ref):
    # x_ref : (B_blk, H, WC)   bf16 activations, channels folded into lanes
    # w*_ref: (3*WC, WC)       bf16 folded conv matrices (row bands: dh = 0,1,2)
    # b*_ref: (1, WC)          f32 bias tiled along W
    # o_ref : (B_blk, H, WC)   f32 output
    blk, H, WC = x_ref.shape
    M = blk * H

    # Flatten images into the matmul M-dim; keep elementwise math in f32.
    x = x_ref[...].reshape(M, WC).astype(jnp.float32)

    # Row-within-image index.  After a whole-matrix roll, the rows selected by
    # these masks are (a) the 'same'-padding border rows that must be zero and
    # (b) exactly the rows that would otherwise bleed across image boundaries.
    row = lax.broadcasted_iota(jnp.int32, (M, 1), 0) % H
    not_first = row != 0
    not_last = row != (H - 1)

    def conv3x3(v, w_ref, b_ref):
        v_up = jnp.where(not_first, pltpu.roll(v, shift=1, axis=0), 0.0)      # v[h-1]
        v_dn = jnp.where(not_last, pltpu.roll(v, shift=M - 1, axis=0), 0.0)   # v[h+1]
        # Single K = 3*WC contraction per conv; operands bf16, accumulate f32.
        lhs = jnp.concatenate([v_up, v, v_dn], axis=-1).astype(jnp.bfloat16)
        acc = jnp.dot(lhs, w_ref[...], preferred_element_type=jnp.float32)
        return acc + b_ref[...]

    h = jnp.maximum(conv3x3(x, w1_ref, b1_ref), 0.0)        # conv1 + bias + ReLU (f32)
    out = conv3x3(h, w2_ref, b2_ref) + x                    # conv2 + bias + residual
    o_ref[...] = out.reshape(blk, H, WC).astype(o_ref.dtype)


def _fold_conv_weight(w_oihw, width):
    """OIHW (Cout, Cin, 3, 3) -> (3*width*Cin, width*Cout) banded matrix (bf16).

    Row [dh*width*Cin + (w'+dw-1)*Cin + ci], col [w'*Cout + co] holds
    w[co, ci, dh, dw]; entries whose w'+dw-1 falls outside [0, width) are
    dropped, implementing the 'same' zero padding along W.
    """
    w_hwio = jnp.transpose(w_oihw, (2, 3, 1, 0)).astype(jnp.float32)  # (3,3,Ci,Co)
    bands = []
    for dh in range(3):
        big = sum(jnp.kron(jnp.eye(width, k=1 - dw, dtype=jnp.float32), w_hwio[dh, dw])
                  for dw in range(3))
        bands.append(big)
    # TODO(synk): only 3W-2 of the W^2 CxC blocks are nonzero (~18% dense at
    # W=16); only worth a halo'd/banded contraction once a bundle dump shows
    # vmatmul is the binding slot (it is DMA/overhead-bound at these shapes).
    return jnp.concatenate(bands, axis=0).astype(jnp.bfloat16)   # (3*W*Ci, W*Co)


def _fold_bias(b, width):
    c = b.shape[0]
    return jnp.tile(b, width).reshape(1, width * c).astype(jnp.float32)


def fold_params(w1_oihw, b1, w2_oihw, b2, width):
    """Once-per-model work, hoisted out of the per-call path."""
    return (_fold_conv_weight(w1_oihw, width), _fold_bias(b1, width),
            _fold_conv_weight(w2_oihw, width), _fold_bias(b2, width))


def fold_activations(x_nchw):
    """NCHW f32 -> (B, H, W*C) bf16 lane-dense layout (pay the transpose once)."""
    B, C, H, W = x_nchw.shape
    return jnp.transpose(x_nchw, (0, 2, 3, 1)).reshape(B, H, W * C).astype(jnp.bfloat16)


def unfold_activations(x_fold, channels):
    B, H, WC = x_fold.shape
    W = WC // channels
    return jnp.transpose(x_fold.reshape(B, H, W, channels), (0, 3, 1, 2))


def _pick_block_b(batch, height, target_rows=256):
    """Largest divisor of batch keeping the matmul M-dim (block_b*H) <= target."""
    best = 1
    for d in range(1, batch + 1):
        if batch % d == 0 and d * height <= target_rows:
            best = d
    if batch // best >= 2:
        return best
    # v7x has 2 TensorCores: prefer >=2 grid steps if that still keeps M >= 128.
    for d in range(best - 1, 0, -1):
        if batch % d == 0 and d * height >= 128:
            return d
    return best


def resblock_pallas_folded(x_fold, w1_big, b1_fold, w2_big, b2_fold, *, block_b=None):
    B, H, WC = x_fold.shape
    if block_b is None:
        block_b = _pick_block_b(B, H)
    assert B % block_b == 0
    kwc = w1_big.shape[0]   # 3*WC

    return pl.pallas_call(
        resblock_kernel,
        out_shape=jax.ShapeDtypeStruct((B, H, WC), jnp.float32),
        grid_spec=pltpu.PrefetchScalarGridSpec(
            num_scalar_prefetch=0,
            grid=(B // block_b,),
            in_specs=[
                pl.BlockSpec((block_b, H, WC), lambda b: (b, 0, 0)),
                # Constant index_maps: weights/biases stay VMEM-resident across
                # the grid (revisit skip).  For much larger W*C, also set
                # pipeline_mode=pl.Buffered(1) to drop the second buffer.
                pl.BlockSpec((kwc, WC), lambda b: (0, 0)),
                pl.BlockSpec((1, WC), lambda b: (0, 0)),
                pl.BlockSpec((kwc, WC), lambda b: (0, 0)),
                pl.BlockSpec((1, WC), lambda b: (0, 0)),
            ],
            out_specs=pl.BlockSpec((block_b, H, WC), lambda b: (b, 0, 0)),
        ),
        compiler_params=pltpu.CompilerParams(
            dimension_semantics=("parallel",),   # images are fully independent
            # Re-derive when scaling W or C: folded weights are 2*(3*W*C)*(W*C)
            # bf16 elements and must leave headroom under v7x's 64 MiB VMEM.
            vmem_limit_bytes=32 * 1024 * 1024),
    )(x_fold, w1_big, b1_fold, w2_big, b2_fold)


def resblock_pallas_nchw(x_nchw, w1_oihw, b1, w2_oihw, b2):
    """One-shot PyTorch-compatible entry point (NCHW in / NCHW out).

    For repeated use (ResNet stacks), call fold_params once and keep the
    activations in the folded (B, H, W*C) layout between blocks instead.
    """
    C, W = x_nchw.shape[1], x_nchw.shape[3]
    params = fold_params(w1_oihw, b1, w2_oihw, b2, W)
    out_fold = resblock_pallas_folded(fold_activations(x_nchw), *params)
    return unfold_activations(out_fold, C)


def resblock_reference_nchw(x_nchw, w1_oihw, b1, w2_oihw, b2):
    """Plain-JAX reference matching torch F.conv2d semantics."""
    dn = ("NCHW", "OIHW", "NCHW")
    h = lax.conv_general_dilated(x_nchw, w1_oihw, (1, 1), "SAME",
                                 dimension_numbers=dn,
                                 precision=lax.Precision.HIGHEST)
    h = jnp.maximum(h + b1.reshape(1, -1, 1, 1), 0.0)
    o = lax.conv_general_dilated(h, w2_oihw, (1, 1), "SAME",
                                 dimension_numbers=dn,
                                 precision=lax.Precision.HIGHEST)
    return o + b2.reshape(1, -1, 1, 1) + x_nchw


if __name__ == "__main__":
    B, C, H, W = 2, 8, 16, 16        # W*C = 128 -> exactly one lane-dense vreg row

    key = jax.random.PRNGKey(0)
    kx, kw1, kb1, kw2, kb2 = jax.random.split(key, 5)

    x = jax.random.normal(kx, (B, C, H, W), jnp.float32)           # NCHW like torch
    w1 = jax.random.normal(kw1, (C, C, 3, 3), jnp.float32) * 0.1   # OIHW like torch
    b1 = jax.random.normal(kb1, (C,), jnp.float32) * 0.1
    w2 = jax.random.normal(kw2, (C, C, 3, 3), jnp.float32) * 0.1
    b2 = jax.random.normal(kb2, (C,), jnp.float32) * 0.1

    # Once-per-model work hoisted out of the kernel call path.
    params = fold_params(w1, b1, w2, b2, W)
    x_fold = fold_activations(x)

    run = jax.jit(resblock_pallas_folded)
    out_fold = jax.block_until_ready(run(x_fold, *params))
    out = unfold_activations(out_fold, C)

    ref = jax.block_until_ready(resblock_reference_nchw(x, w1, b1, w2, b2))

    assert out.shape == (B, C, H, W)
    # bf16 matmul operands + bf16-stored residual input => ~1e-2-level error
    # vs the f32 HIGHEST-precision reference.
    err = float(jnp.max(jnp.abs(out - ref)))
    assert err < 5e-2, f"mismatch vs JAX conv reference: max abs err = {err}"

    print("KERNEL_OK")
</pallas_src>

<mosaic_0001>
module attributes {stable_mosaic.version = 11 : i64} {
  func.func @resblock_kernel(%arg0: i32, %arg1: memref<2x16x128xbf16, #tpu.memory_space<vmem>>, %arg2: memref<384x128xbf16, #tpu.memory_space<vmem>>, %arg3: memref<1x128xf32, #tpu.memory_space<vmem>>, %arg4: memref<384x128xbf16, #tpu.memory_space<vmem>>, %arg5: memref<1x128xf32, #tpu.memory_space<vmem>>, %arg6: memref<2x16x128xf32, #tpu.memory_space<vmem>>) attributes {dimension_semantics = [#tpu.dimension_semantics<parallel>], iteration_bounds = array<i64: 1>, scalar_prefetch = 0 : i64, scratch_operands = 0 : i64, tpu.core_type = #tpu.core_type<tc>, window_params = [{transform_indices = @transform_0, window_bounds = array<i64: 2, 16, 128>}, {pipeline_mode = #tpu.pipeline_mode<synchronous>, transform_indices = @transform_1, window_bounds = array<i64: 384, 128>}, {pipeline_mode = #tpu.pipeline_mode<synchronous>, transform_indices = @transform_2, window_bounds = array<i64: 1, 128>}, {pipeline_mode = #tpu.pipeline_mode<synchronous>, transform_indices = @transform_3, window_bounds = array<i64: 384, 128>}, {pipeline_mode = #tpu.pipeline_mode<synchronous>, transform_indices = @transform_4, window_bounds = array<i64: 1, 128>}, {transform_indices = @transform_5, window_bounds = array<i64: 2, 16, 128>}]} {
    %c0 = arith.constant 0 : index
    %c0_0 = arith.constant 0 : index
    %c0_1 = arith.constant 0 : index
    %0 = vector.load %arg1[%c0, %c0_0, %c0_1] : memref<2x16x128xbf16, #tpu.memory_space<vmem>>, vector<2x16x128xbf16>
    %1 = vector.shape_cast %0 : vector<2x16x128xbf16> to vector<32x128xbf16>
    %2 = arith.extf %1 : vector<32x128xbf16> to vector<32x128xf32>
    %3 = tpu.iota {dimensions = array<i32: 0>} : vector<32x1xi32>
    %c16_i32 = arith.constant 16 : i32
    %c0_i32 = arith.constant 0 : i32
    %4 = arith.cmpi eq, %c16_i32, %c0_i32 : i32
    %c1_i32 = arith.constant 1 : i32
    %5 = arith.select %4, %c1_i32, %c16_i32 : i32
    %6 = vector.broadcast %5 : i32 to vector<32x1xi32>
    %7 = arith.remsi %3, %6 : vector<32x1xi32>
    %c0_i32_2 = arith.constant 0 : i32
    %8 = vector.broadcast %c0_i32_2 : i32 to vector<32x1xi32>
    %9 = arith.cmpi ne, %7, %8 : vector<32x1xi32>
    %c0_i32_3 = arith.constant 0 : i32
    %10 = vector.broadcast %c0_i32_3 : i32 to vector<32x1xi32>
    %11 = arith.cmpi slt, %7, %10 : vector<32x1xi32>
    %c0_i32_4 = arith.constant 0 : i32
    %12 = arith.cmpi slt, %5, %c0_i32_4 : i32
    %13 = vector.broadcast %12 : i1 to vector<32x1xi1>
    %14 = vector.broadcast %13 : vector<32x1xi1> to vector<32x1xi1>
    %15 = arith.xori %11, %14 : vector<32x1xi1>
    %16 = arith.andi %15, %9 : vector<32x1xi1>
    %17 = vector.broadcast %5 : i32 to vector<32x1xi32>
    %18 = arith.addi %7, %17 : vector<32x1xi32>
    %19 = arith.select %16, %18, %7 : vector<32x1xi1>, vector<32x1xi32>
    %c0_i32_5 = arith.constant 0 : i32
    %20 = vector.broadcast %c0_i32_5 : i32 to vector<32x1xi32>
    %21 = arith.cmpi ne, %19, %20 : vector<32x1xi32>
    %c15_i32 = arith.constant 15 : i32
    %22 = vector.broadcast %c15_i32 : i32 to vector<32x1xi32>
    %23 = arith.cmpi ne, %19, %22 : vector<32x1xi32>
    %c1_i32_6 = arith.constant 1 : i32
    %24 = tpu.dynamic_rotate %2 by %c1_i32_6 dim 0 : vector<32x128xf32>, i32 -> vector<32x128xf32>
    %cst = arith.constant 0.000000e+00 : f32
    %25 = vector.shape_cast %21 : vector<32x1xi1> to vector<32x1xi1>
    %26 = vector.broadcast %25 : vector<32x1xi1> to vector<32x128xi1>
    %27 = vector.broadcast %cst : f32 to vector<32x128xf32>
    %28 = arith.select %26, %24, %27 : vector<32x128xi1>, vector<32x128xf32>
    %c31_i32 = arith.constant 31 : i32
    %29 = tpu.dynamic_rotate %2 by %c31_i32 dim 0 : vector<32x128xf32>, i32 -> vector<32x128xf32>
    %cst_7 = arith.constant 0.000000e+00 : f32
    %30 = vector.shape_cast %23 : vector<32x1xi1> to vector<32x1xi1>
    %31 = vector.broadcast %30 : vector<32x1xi1> to vector<32x128xi1>
    %32 = vector.broadcast %cst_7 : f32 to vector<32x128xf32>
    %33 = arith.select %31, %29, %32 : vector<32x128xi1>, vector<32x128xf32>
    %34 = tpu.concatenate %28, %2, %33 in 1 : vector<32x128xf32>, vector<32x128xf32>, vector<32x128xf32> -> vector<32x384xf32>
    %35 = arith.truncf %34 : vector<32x384xf32> to vector<32x384xbf16>
    %c0_8 = arith.constant 0 : index
    %c0_9 = arith.constant 0 : index
    %36 = vector.load %arg2[%c0_8, %c0_9] : memref<384x128xbf16, #tpu.memory_space<vmem>>, vector<384x128xbf16>
    %cst_10 = arith.constant dense<0.000000e+00> : vector<32x128xf32>
    %37 = tpu.matmul %35, %36, %cst_10 {dimension_numbers = #tpu.dot_dimension_numbers<[1], [0], [0], [1], [0, 0, 1, 1], [], []>} : vector<32x384xbf16>, vector<384x128xbf16>, vector<32x128xf32> -> vector<32x128xf32>
    %c0_11 = arith.constant 0 : index
    %c0_12 = arith.constant 0 : index
    %38 = vector.load %arg3[%c0_11, %c0_12] : memref<1x128xf32, #tpu.memory_space<vmem>>, vector<1x128xf32>
    %39 = vector.broadcast %38 : vector<1x128xf32> to vector<32x128xf32>
    %40 = arith.addf %37, %39 : vector<32x128xf32>
    %cst_13 = arith.constant 0.000000e+00 : f32
    %41 = vector.broadcast %cst_13 : f32 to vector<32x128xf32>
    %42 = arith.maximumf %40, %41 : vector<32x128xf32>
    %c1_i32_14 = arith.constant 1 : i32
    %43 = tpu.dynamic_rotate %42 by %c1_i32_14 dim 0 : vector<32x128xf32>, i32 -> vector<32x128xf32>
    %cst_15 = arith.constant 0.000000e+00 : f32
    %44 = vector.shape_cast %21 : vector<32x1xi1> to vector<32x1xi1>
    %45 = vector.broadcast %44 : vector<32x1xi1> to vector<32x128xi1>
    %46 = vector.broadcast %cst_15 : f32 to vector<32x128xf32>
    %47 = arith.select %45, %43, %46 : vector<32x128xi1>, vector<32x128xf32>
    %c31_i32_16 = arith.constant 31 : i32
    %48 = tpu.dynamic_rotate %42 by %c31_i32_16 dim 0 : vector<32x128xf32>, i32 -> vector<32x128xf32>
    %cst_17 = arith.constant 0.000000e+00 : f32
    %49 = vector.shape_cast %23 : vector<32x1xi1> to vector<32x1xi1>
    %50 = vector.broadcast %49 : vector<32x1xi1> to vector<32x128xi1>
    %51 = vector.broadcast %cst_17 : f32 to vector<32x128xf32>
    %52 = arith.select %50, %48, %51 : vector<32x128xi1>, vector<32x128xf32>
    %53 = tpu.concatenate %47, %42, %52 in 1 : vector<32x128xf32>, vector<32x128xf32>, vector<32x128xf32> -> vector<32x384xf32>
    %54 = arith.truncf %53 : vector<32x384xf32> to vector<32x384xbf16>
    %c0_18 = arith.constant 0 : index
    %c0_19 = arith.constant 0 : index
    %55 = vector.load %arg4[%c0_18, %c0_19] : memref<384x128xbf16, #tpu.memory_space<vmem>>, vector<384x128xbf16>
    %cst_20 = arith.constant dense<0.000000e+00> : vector<32x128xf32>
    %56 = tpu.matmul %54, %55, %cst_20 {dimension_numbers = #tpu.dot_dimension_numbers<[1], [0], [0], [1], [0, 0, 1, 1], [], []>} : vector<32x384xbf16>, vector<384x128xbf16>, vector<32x128xf32> -> vector<32x128xf32>
    %c0_21 = arith.constant 0 : index
    %c0_22 = arith.constant 0 : index
    %57 = vector.load %arg5[%c0_21, %c0_22] : memref<1x128xf32, #tpu.memory_space<vmem>>, vector<1x128xf32>
    %58 = vector.broadcast %57 : vector<1x128xf32> to vector<32x128xf32>
    %59 = arith.addf %56, %58 : vector<32x128xf32>
    %60 = arith.addf %59, %2 : vector<32x128xf32>
    %61 = vector.shape_cast %60 : vector<32x128xf32> to vector<2x16x128xf32>
    %c0_23 = arith.constant 0 : index
    %c0_24 = arith.constant 0 : index
    %c0_25 = arith.constant 0 : index
    %62 = vector.load %arg6[%c0_23, %c0_24, %c0_25] : memref<2x16x128xf32, #tpu.memory_space<vmem>>, vector<2x16x128xf32>
    tpu.vector_store %arg6[%c0_23, %c0_24, %c0_25], %61 {strides = array<i32>} : memref<2x16x128xf32, #tpu.memory_space<vmem>>, vector<2x16x128xf32>,
    return
  }
  func.func @transform_0(%arg0: i32) -> (i32, i32, i32) {
    %c0_i32 = arith.constant 0 : i32
    %c0_i32_0 = arith.constant 0 : i32
    %c0_i32_1 = arith.constant 0 : i32
    return %arg0, %c0_i32, %c0_i32_0 : i32, i32, i32
  }
  func.func @transform_1(%arg0: i32) -> (i32, i32) {
    %c0_i32 = arith.constant 0 : i32
    %c0_i32_0 = arith.constant 0 : i32
    %c0_i32_1 = arith.constant 0 : i32
    return %c0_i32, %c0_i32_0 : i32, i32
  }
  func.func @transform_2(%arg0: i32) -> (i32, i32) {
    %c0_i32 = arith.constant 0 : i32
    %c0_i32_0 = arith.constant 0 : i32
    %c0_i32_1 = arith.constant 0 : i32
    return %c0_i32, %c0_i32_0 : i32, i32
  }
  func.func @transform_3(%arg0: i32) -> (i32, i32) {
    %c0_i32 = arith.constant 0 : i32
    %c0_i32_0 = arith.constant 0 : i32
    %c0_i32_1 = arith.constant 0 : i32
    return %c0_i32, %c0_i32_0 : i32, i32
  }
  func.func @transform_4(%arg0: i32) -> (i32, i32) {
    %c0_i32 = arith.constant 0 : i32
    %c0_i32_0 = arith.constant 0 : i32
    %c0_i32_1 = arith.constant 0 : i32
    return %c0_i32, %c0_i32_0 : i32, i32
  }
  func.func @transform_5(%arg0: i32) -> (i32, i32, i32) {
    %c0_i32 = arith.constant 0 : i32
    %c0_i32_0 = arith.constant 0 : i32
    %c0_i32_1 = arith.constant 0 : i32
    return %arg0, %c0_i32, %c0_i32_0 : i32, i32, i32
  }
}

</mosaic_0001>

<bundles_post_ra>
// kernel: resblock_pallas_folded.1
= control target key start
LH: loop header
LB: loop body
LE: loop exit
PB: predicated region body
PF: predicated region fallthrough
CT: control target
= control target key end

     0   :  { %10 = vsyncpa [#allocation3], 0  ;;  %s1313_s0 = inlined_call_operand.hbm [shape: bf16[2,16,128], index: 0, kind: input, shape index: {}]   ;;  %s1314_s1 = inlined_call_operand.hbm [shape: bf16[384,128], index: 1, kind: input, shape index: {}]   ;;  %s1315_s2 = inlined_call_operand.vmem [shape: f32[1,128], index: 2, kind: input, shape index: {}]   ;;  %s1316_s3 = inlined_call_operand.hbm [shape: bf16[384,128], index: 3, kind: input, shape index: {}]   ;;  %s1317_s4 = inlined_call_operand.vmem [shape: f32[1,128], index: 4, kind: input, shape index: {}]   ;;  %s1318_s5 = inlined_call_operand.hbm [shape: f32[2,16,128], index: 5, kind: output, shape index: {}]  }
   0x1   :  { %11 = vsyncpa [#allocation6], 0 }
   0x2   :  { %12 = vsyncpa [#allocation4], 0  ;;  %s30_s20 = sshll.u32 %s1314_s1, 4  ;;  %s1155_s21 = smov [#allocation5]   ;;  %s31_s20 = int_to_ptr.hbm [resolvable:$true] %s30_s20 }
   0x3   :  { %s32_s22 = sshll.u32 %s1155_s21, 4  ;;  %s17_s25 = sshll.u32 %s1313_s0, 4  ;;  %s33_s22 = int_to_ptr.vmem [resolvable:$true] %s32_s22  ;;  %s18_s25 = int_to_ptr.hbm [resolvable:$true] %s17_s25 }
   0x4   :  { %s1156_s26 = smov 64   ;;  %s1157_s27 = smov 4  }
   0x5   :  { %38 = dma.hbm_to_vmem [thread:$0]  %s31_s20, 3072, %s33_s22, [#allocation6], %s1156_s26, %s1156_s26, %s1157_s27  }
   0x6   :  { %s1158_s28 = smov [#allocation2]   ;;  %s45_s7 = sshll.u32 %s1316_s3, 4  ;;  %s46_s7 = int_to_ptr.hbm [resolvable:$true] %s45_s7 }
   0x7   :  { %s19_s29 = sshll.u32 %s1158_s28, 4  ;;  %s1159_s1 = smov [#allocation7]   ;;  %s20_s29 = int_to_ptr.vmem [resolvable:$true] %s19_s29 }
   0x8   :  { %25 = dma.hbm_to_vmem [thread:$0]  %s18_s25, 256, %s20_s29, [#allocation3], %s1156_s26, %s1156_s26, %s1157_s27  }
   0x9   :  { %s47_s8 = sshll.u32 %s1159_s1, 4  ;;  %s48_s8 = int_to_ptr.vmem [resolvable:$true] %s47_s8 }
   0xa   :  { %53 = dma.hbm_to_vmem [thread:$0]  %s46_s7, 3072, %s48_s8, [#allocation6], %s1156_s26, %s1156_s26, %s1157_s27  }
   0xb   :  { %1149 = dma.done.wait [#allocation3], 256  }
   0xc   :  { %1150 = vsyncadd [#allocation3], 4294967040 }
   0xd   :  { %1151 = dma.done.wait [#allocation6], 6144  }
   0xe   :  { %1152 = vsyncadd [#allocation6], 4294961152  ;;  %v976_v0 = vld [vmem:[#allocation5 + $0x38] sm:$0xff]  ;;  %v975_v3 = vld [vmem:[#allocation5 + $0x30] sm:$0xff]  ;;  %v76_v12 = vlaneseq  ;;  %vm1160_vm4 = vmmov 1   ;;  %s739_s13 = sshll.u32 %s1318_s5, 4  ;;  %s740_s13 = int_to_ptr.hbm [resolvable:$true] %s739_s13 }
   0xf   :  { %v984_v1 = vld [vmem:[#allocation5 + $0x78] sm:$0xff]  ;;  %381 = vmatpush.bf16.msra.mxu0 %v976_v0  ;;  %v983_v4 = vld [vmem:[#allocation5 + $0x70] sm:$0xff]  ;;  %v974_v6 = vld [vmem:[#allocation5 + $0x28] sm:$0xff]  ;;  %s1162_s14 = smov 128   ;;  %s1163_s15 = smov 8  }
  0x10   :  { %v992_v2 = vld [vmem:[#allocation5 + $0xb8] sm:$0xff]  ;;  %400 = vmatpush.bf16.msra.mxu1 %v984_v1  ;;  %v991_v5 = vld [vmem:[#allocation5 + $0xb0] sm:$0xff]  ;;  %v982_v7 = vld [vmem:[#allocation5 + $0x68] sm:$0xff]  ;;  %v1205_v18 = vshrl.u32 %v76_v12, 7 }
  0x11   :  { %419 = vmatpush.bf16.msra.mxu2 %v992_v2  ;;  %v990_v8 = vld [vmem:[#allocation5 + $0xa8] sm:$0xff]  ;;  %v973_v9 = vld [vmem:[#allocation5 + $0x20] sm:$0xff]  ;;  %v972_v13 = vld [vmem:[#allocation5 + $0x18] sm:$0xff] }
  0x12   :  { %v981_v10 = vld [vmem:[#allocation5 + $0x60] sm:$0xff]  ;;  %v980_v14 = vld [vmem:[#allocation5 + $0x58] sm:$0xff]  ;;  %v1018_v16 = vld [vmem:[#allocation2] sm:$0xff]   ;;  %v78_v26 = vadd.s32 8, %v1205_v18  ;;  %v85_v29 = vand.u32 15, %v1205_v18  ;;  %vm141_vm0 = vcmp.lt.s32.totalorder %v1205_v18, 1 }
  0x13   :  { %382 = vmatpush.bf16.msra.mxu0 %v975_v3  ;;  %v989_v11 = vld [vmem:[#allocation5 + $0xa0] sm:$0xff]  ;;  %v988_v15 = vld [vmem:[#allocation5 + $0x98] sm:$0xff]  ;;  %v971_v19 = vld [vmem:[#allocation5 + $0x10] sm:$0xff]  ;;  %v1207_v21 = vunpack.c.l.bf16 %v1018_v16  ;;  %v1209_v22 = vunpack.c.h.bf16 %v1018_v16  ;;  %vm162_vm1 = vcmp.lt.s32.totalorder %v1205_v18, 7  ;;  %v79_v51 = vadd.s32 16, %v1205_v18 }
  0x14   :  { %401 = vmatpush.bf16.msra.mxu1 %v983_v4  ;;  %v1203_v17 = vld [vmem:[#allocation2 + $0x8] sm:$0xff]   ;;  %v979_v20 = vld [vmem:[#allocation5 + $0x50] sm:$0xff]  ;;  %v970_v27 = vld [vmem:[#allocation5 + $0x8] sm:$0xff]  ;;  %v92_v37 = vand.u32 15, %v78_v26  ;;  %vm129_vm2 = vcmp.ne.s32.totalorder %v85_v29, 0  ;;  %v80_v53 = vadd.s32 24, %v1205_v18 }
  0x15   :  { %420 = vmatpush.bf16.msra.mxu2 %v991_v5  ;;  %v1212_v23 = vunpack.c.h.bf16 %v1203_v17  ;;  %v987_v24 = vld [vmem:[#allocation5 + $0x90] sm:$0xff]  ;;  %v1215_v25 = vunpack.c.l.bf16 %v1203_v17  ;;  %v978_v28 = vld [vmem:[#allocation5 + $0x48] sm:$0xff]  ;;  %v137_v30 = vrot.slane %v1207_v21, 7  ;;  %v138_v31 = vrot.slane %v1209_v22, 7  ;;  %v969_v38 = vld [vmem:[#allocation5] sm:$0xff] }
  0x16   :  { %v986_v33 = vld [vmem:[#allocation5 + $0x88] sm:$0xff]  ;;  %v158_v34 = vrot.slane %v1207_v21, 1  ;;  %v159_v35 = vrot.slane %v1209_v22, 1  ;;  %v977_v39 = vld [vmem:[#allocation5 + $0x40] sm:$0xff]  ;;  %v1008_v45 = vld [vmem:[#allocation7 + $0x78] sm:$0xff]  ;;  %vm134_vm3 = vcmp.ne.s32.totalorder %v92_v37, 15 }
  0x17   :  { %383 = vmatpush.bf16.msra.mxu0 %v974_v6  ;;  %v140_v32 = vrot.slane %v1212_v23, 7  ;;  %v160_v36 = vrot.slane %v1215_v25, 1  ;;  %v144_v40 = vsel %vm141_vm0, %v137_v30, %v138_v31  ;;  %v985_v42 = vld [vmem:[#allocation5 + $0x80] sm:$0xff]  ;;  %vm1236_vm5 = vmpackc.low %vm1160_vm4, %vm129_vm2  ;;  %v1007_v50 = vld [vmem:[#allocation7 + $0x70] sm:$0xff]  ;;  %v139_v54 = vrot.slane %v1215_v25, 7 }
  0x18   :  { %402 = vmatpush.bf16.msra.mxu1 %v982_v7  ;;  %v165_v44 = vsel %vm162_vm1, %v158_v34, %v159_v35  ;;  %vm1241_vm6 = vmpackc.low %vm134_vm3, %vm1160_vm4  ;;  %v1006_v52 = vld [vmem:[#allocation7 + $0x68] sm:$0xff]  ;;  %v99_v55 = vand.u32 15, %v79_v51  ;;  %v161_v56 = vrot.slane %v1212_v23, 1  ;;  %v106_v57 = vand.u32 15, %v80_v53  ;;  %v1016_v2 = vld [vmem:[#allocation7 + $0xb8] sm:$0xff] }
  0x19   :  { %421 = vmatpush.bf16.msra.mxu2 %v990_v8  ;;  %v145_v41 = vsel %vm141_vm0, %v140_v32, %v137_v30  ;;  %v164_v43 = vsel %vm162_vm1, %v159_v35, %v160_v36  ;;  %v142_v58 = vsel %vm141_vm0, %v139_v54, %v140_v32  ;;  %v143_v59 = vsel %vm141_vm0, %v138_v31, %v139_v54  ;;  %v1005_v3 = vld [vmem:[#allocation7 + $0x60] sm:$0xff]  ;;  %v1015_v4 = vld [vmem:[#allocation7 + $0xb0] sm:$0xff]  ;;  %v1004_v5 = vld [vmem:[#allocation7 + $0x58] sm:$0xff] }
  0x1a   :  { %v850_v46 = vpack.c.bf16 %v144_v40, %v145_v41  ;;  %v856_v48 = vpack.c.bf16 %v164_v43, %v165_v44  ;;  %vm131_vm7 = vcmp.ne.s32.totalorder %v99_v55, 0  ;;  %v163_v60 = vsel %vm162_vm1, %v160_v36, %v161_v56  ;;  %v1000_v6 = vld [vmem:[#allocation7 + $0x38] sm:$0xff]  ;;  %v1014_v7 = vld [vmem:[#allocation7 + $0xa8] sm:$0xff]  ;;  %v1003_v8 = vld [vmem:[#allocation7 + $0x50] sm:$0xff] }
  0x1b   :  { %384 = vmatpush.bf16.msra.mxu0 %v973_v9  ;;  %v166_v61 = vsel %vm162_vm1, %v161_v56, %v158_v34  ;;  %vm136_vm8 = vcmp.ne.s32.totalorder %v106_v57, 15  ;;  %v853_v62 = vpack.c.bf16 %v142_v58, %v143_v59  ;;  %vm1262_vm9 = vmpackc.low %vm1160_vm4, %vm131_vm7  ;;  %668 = vmatpush.bf16.msra.mxu3 %v1000_v6  ;;  %v999_v9 = vld [vmem:[#allocation7 + $0x30] sm:$0xff]  ;;  %v998_v12 = vld [vmem:[#allocation7 + $0x28] sm:$0xff] }
  0x1c   :  { %403 = vmatpush.bf16.msra.mxu1 %v981_v10  ;;  %v859_v0 = vpack.c.bf16 %v166_v61, %v163_v60  ;;  %vm1267_vm10 = vmpackc.low %vm136_vm8, %vm1160_vm4  ;;  %v1013_v10 = vld [vmem:[#allocation7 + $0xa0] sm:$0xff]  ;;  %v1051_v29 = vld [vmem:[%s1315_s2] ss:$0 sm:$0xff] }
  0x1d   :  { %422 = vmatpush.bf16.msra.mxu2 %v989_v11  ;;  %v1002_v11 = vld [vmem:[#allocation7 + $0x48] sm:$0xff]  ;;  %v993_v30 = vld [vmem:[#allocation7] sm:$0xff] }
  0x1f   :  { %385 = vmatpush.bf16.msra.mxu0 %v972_v13  ;;  %669 = vmatpush.bf16.msra.mxu3 %v999_v9  ;;  %v1012_v13 = vld [vmem:[#allocation7 + $0x98] sm:$0xff] }
  0x20   :  { %404 = vmatpush.bf16.msra.mxu1 %v980_v14  ;;  %v1001_v14 = vld [vmem:[#allocation7 + $0x40] sm:$0xff] }
  0x21   :  { %423 = vmatpush.bf16.msra.mxu2 %v988_v15  ;;  %v997_v15 = vld [vmem:[#allocation7 + $0x20] sm:$0xff] }
  0x23   :  { %386 = vmatpush.bf16.msra.mxu0 %v971_v19  ;;  %670 = vmatpush.bf16.msra.mxu3 %v998_v12  ;;  %v1010_v19 = vld [vmem:[#allocation7 + $0x88] sm:$0xff] }
  0x24   :  { %405 = vmatpush.bf16.msra.mxu1 %v979_v20  ;;  %v995_v20 = vld [vmem:[#allocation7 + $0x10] sm:$0xff] }
  0x25   :  { %424 = vmatpush.bf16.msra.mxu2 %v987_v24  ;;  %v1009_v24 = vld [vmem:[#allocation7 + $0x80] sm:$0xff] }
  0x27   :  { %387 = vmatpush.bf16.msra.mxu0 %v970_v27  ;;  %671 = vmatpush.bf16.msra.mxu3 %v997_v15 }
  0x28   :  { %406 = vmatpush.bf16.msra.mxu1 %v978_v28  ;;  %v994_v28 = vld [vmem:[#allocation7 + $0x8] sm:$0xff] }
  0x29   :  { %425 = vmatpush.bf16.msra.mxu2 %v986_v33 }
  0x2b   :  { %388 = vmatpush.bf16.msra.mxu0 %v969_v38 }
  0x2c   :  { %407 = vmatpush.bf16.msra.mxu1 %v977_v39 }
  0x2d   :  { %426 = vmatpush.bf16.msra.mxu2 %v985_v42 }
  0x2e   :  { %851 = vmatmul.msk.bf16.vlgmr.msra.gmra.mxu0 %vm1236_vm5, %v850_v46 }
  0x2f   :  { %687 = vmatpush.bf16.msrb.mxu0 %v1008_v45  ;;  %408 = vmatmul.bf16.vlgmr.msra.gmra.mxu1 %v1018_v16  ;;  %v1011_v16 = vld [vmem:[#allocation7 + $0x90] sm:$0xff] }
  0x30   :  { %857 = vmatmul.msk.bf16.vlgmr.msra.gmra.mxu2 %vm1241_vm6, %v856_v48  ;;  %706 = vmatpush.bf16.msrb.mxu1 %v1016_v2 }
  0x31   :  { %1026 = vmatpush.bf16.msrb.mxu2 %v1008_v45 }
  0x33   :  { %688 = vmatpush.bf16.msrb.mxu0 %v1007_v50 }
  0x34   :  { %707 = vmatpush.bf16.msrb.mxu1 %v1015_v4 }
  0x35   :  { %1027 = vmatpush.bf16.msrb.mxu2 %v1007_v50 }
  0x37   :  { %689 = vmatpush.bf16.msrb.mxu0 %v1006_v52 }
  0x38   :  { %708 = vmatpush.bf16.msrb.mxu1 %v1014_v7 }
  0x39   :  { %1028 = vmatpush.bf16.msrb.mxu2 %v1006_v52 }
  0x3b   :  { %690 = vmatpush.bf16.msrb.mxu0 %v1005_v3 }
  0x3c   :  { %709 = vmatpush.bf16.msrb.mxu1 %v1013_v10 }
  0x3d   :  { %1029 = vmatpush.bf16.msrb.mxu2 %v1005_v3 }
  0x3e   :  { %854 = vmatmul.msk.bf16.gmra.mxu0 %vm1262_vm9, %v853_v62 }
  0x3f   :  { %413 = vmatmul.bf16.gmra.mxu1 %v1203_v17  ;;  %691 = vmatpush.bf16.msrb.mxu0 %v1004_v5  ;;  %v996_v17 = vld [vmem:[#allocation7 + $0x18] sm:$0xff] }
  0x40   :  { %860 = vmatmul.msk.bf16.gmra.mxu2 %vm1267_vm10, %v859_v0  ;;  %710 = vmatpush.bf16.msrb.mxu1 %v1012_v13 }
  0x41   :  { %1030 = vmatpush.bf16.msrb.mxu2 %v1004_v5  ;;  %672 = vmatpush.bf16.msra.mxu3 %v996_v17  ;;  %v1052_v17 = vld [vmem:[%s1317_s4] ss:$0 sm:$0xff]  ;;  %s1161_s4 = smov [#allocation8]  }
  0x42   :  { %s737_s10 = sshll.u32 %s1161_s4, 4  ;;  %s738_s10 = int_to_ptr.vmem [resolvable:$true] %s737_s10 }
  0x43   :  { %692 = vmatpush.bf16.msrb.mxu0 %v1003_v8 }
  0x44   :  { %711 = vmatpush.bf16.msrb.mxu1 %v1011_v16 }
  0x45   :  { %1031 = vmatpush.bf16.msrb.mxu2 %v1003_v8  ;;  %673 = vmatpush.bf16.msra.mxu3 %v995_v20 }
  0x47   :  { %693 = vmatpush.bf16.msrb.mxu0 %v1002_v11 }
  0x48   :  { %712 = vmatpush.bf16.msrb.mxu1 %v1010_v19 }
  0x49   :  { %1032 = vmatpush.bf16.msrb.mxu2 %v1002_v11  ;;  %674 = vmatpush.bf16.msra.mxu3 %v994_v28 }
  0x4b   :  { %694 = vmatpush.bf16.msrb.mxu0 %v1001_v14 }
  0x4c   :  { %713 = vmatpush.bf16.msrb.mxu1 %v1009_v24 }
  0x4d   :  { %1033 = vmatpush.bf16.msrb.mxu2 %v1001_v14  ;;  %675 = vmatpush.bf16.msra.mxu3 %v993_v30 }
  0x51   :  { %1034 = vmatpush.bf16.msrb.mxu3 %v1016_v2 }
  0x55   :  { %1035 = vmatpush.bf16.msrb.mxu3 %v1015_v4 }
  0x59   :  { %1036 = vmatpush.bf16.msrb.mxu3 %v1014_v7 }
  0x5d   :  { %1037 = vmatpush.bf16.msrb.mxu3 %v1013_v10 }
  0x61   :  { %1038 = vmatpush.bf16.msrb.mxu3 %v1012_v13 }
  0x65   :  { %1039 = vmatpush.bf16.msrb.mxu3 %v1011_v16 }
  0x69   :  { %1040 = vmatpush.bf16.msrb.mxu3 %v1010_v19 }
  0x6d   :  { %1041 = vmatpush.bf16.msrb.mxu3 %v1009_v24 }
  0xab   :  { %v390_v26 = vpop.f32.mrf.mxu0 }
  0xac   :  { %v409_v27 = vpop.f32.mrf.mxu1  ;;  %v391_v31 = vadd.f32 %v1051_v29, %v390_v26 }
  0xae   :  { %v410_v35 = vadd.f32 %v409_v27, %v391_v31 }
  0xb3   :  { %v428_v32 = vpop.f32.mrf.mxu2  ;;  %v392_v33 = vpop.f32.mrf.mxu0 }
  0xb4   :  { %v411_v34 = vpop.f32.mrf.mxu1  ;;  %v393_v36 = vadd.f32 %v1051_v29, %v392_v33  ;;  %v429_v37 = vadd.f32 %v428_v32, %v410_v35 }
  0xb6   :  { %v412_v38 = vadd.f32 %v411_v34, %v393_v36  ;;  %v438_v43 = vmax.f32 %v429_v37, 0.0 }
  0xb8   :  { %v454_v56 = vrot.slane %v438_v43, 1  ;;  %v442_v5 = vrot.slane %v438_v43, 7 }
  0xbb   :  { %v430_v39 = vpop.f32.mrf.mxu2  ;;  %v395_v41 = vpop.f32.mrf.mxu0 }
  0xbc   :  { %v431_v40 = vadd.f32 %v430_v39, %v412_v38  ;;  %v396_v42 = vadd.f32 %v1051_v29, %v395_v41  ;;  %v414_v45 = vpop.f32.mrf.mxu1 }
  0xbe   :  { %v439_v44 = vmax.f32 %v431_v40, 0.0  ;;  %v415_v46 = vadd.f32 %v414_v45, %v396_v42 }
  0xc0   :  { %v467_v48 = vpack.c.bf16 %v439_v44, %v438_v43  ;;  %v455_v53 = vrot.slane %v439_v44, 1  ;;  %v443_v3 = vrot.slane %v439_v44, 7 }
  0xc2   :  { %695 = vmatmul.bf16.vlgmr.msrb.gmra.mxu0 %v467_v48  ;;  %v460_v61 = vsel %vm162_vm1, %v454_v56, %v455_v53  ;;  %v448_v8 = vsel %vm141_vm0, %v442_v5, %v443_v3 }
  0xc3   :  { %v433_v50 = vpop.f32.mrf.mxu2  ;;  %v397_v52 = vpop.f32.mrf.mxu0 }
  0xc4   :  { %v434_v51 = vadd.f32 %v433_v50, %v415_v46  ;;  %v398_v55 = vadd.f32 %v1051_v29, %v397_v52  ;;  %v416_v58 = vpop.f32.mrf.mxu1 }
  0xc6   :  { %v440_v54 = vmax.f32 %v434_v51, 0.0  ;;  %v417_v59 = vadd.f32 %v416_v58, %v398_v55 }
  0xc8   :  { %v456_v57 = vrot.slane %v440_v54, 1  ;;  %v444_v11 = vrot.slane %v440_v54, 7 }
  0xca   :  { %v459_v60 = vsel %vm162_vm1, %v455_v53, %v456_v57  ;;  %v447_v12 = vsel %vm141_vm0, %v443_v3, %v444_v11 }
  0xcb   :  { %v435_v62 = vpop.f32.mrf.mxu2  ;;  %v964_v0 = vpack.c.bf16 %v459_v60, %v460_v61 }
  0xcc   :  { %v436_v2 = vadd.f32 %v435_v62, %v417_v59 }
  0xcd   :  { %965 = vmatmul.msk.bf16.vlgmr.msrb.gmra.mxu1 %vm1241_vm6, %v964_v0 }
  0xce   :  { %v441_v4 = vmax.f32 %v436_v2, 0.0 }
  0xd0   :  { %v445_v6 = vrot.slane %v441_v4, 7  ;;  %v470_v7 = vpack.c.bf16 %v441_v4, %v440_v54  ;;  %v457_v14 = vrot.slane %v441_v4, 1 }
  0xd2   :  { %700 = vmatmul.bf16.vlgmr.msrb.gmra.mxu2 %v470_v7  ;;  %v449_v9 = vsel %vm141_vm0, %v445_v6, %v442_v5  ;;  %v446_v49 = vsel %vm141_vm0, %v444_v11, %v445_v6  ;;  %v458_v15 = vsel %vm162_vm1, %v456_v57, %v457_v14  ;;  %v461_v16 = vsel %vm162_vm1, %v457_v14, %v454_v56 }
  0xd3   :  { %v958_v10 = vpack.c.bf16 %v448_v8, %v449_v9  ;;  %v961_v13 = vpack.c.bf16 %v446_v49, %v447_v12  ;;  %v967_v47 = vpack.c.bf16 %v461_v16, %v458_v15 }
  0xd5   :  { %959 = vmatmul.msk.bf16.vlgmr.msra.gmra.mxu3 %vm1236_vm5, %v958_v10 }
  0xe5   :  { %962 = vmatmul.msk.bf16.gmra.mxu3 %vm1262_vm9, %v961_v13 }
  0xf5   :  { %968 = vmatmul.msk.bf16.vlgmr.msrb.gmra.mxu3 %vm1267_vm10, %v967_v47 }
 0x13f   :  { %v696_v19 = vpop.f32.mrf.mxu0 }
 0x147   :  { %v698_v30 = vpop.f32.mrf.mxu0 }
 0x14a   :  { %v715_v63 = vpop.f32.mrf.mxu1 }
 0x152   :  { %v717_v32 = vpop.f32.mrf.mxu1 }
 0x155   :  { %v701_v37 = vpop.f32.mrf.mxu2 }
 0x158   :  { %v677_v20 = vpop.f32.mrf.mxu3 }
 0x159   :  { %v678_v24 = vadd.f32 %v1052_v17, %v677_v20 }
 0x15b   :  { %v697_v26 = vadd.f32 %v696_v19, %v678_v24 }
 0x15d   :  { %v716_v27 = vadd.f32 %v715_v63, %v697_v26  ;;  %v703_v42 = vpop.f32.mrf.mxu2 }
 0x15f   :  { %v725_v28 = vadd.f32 %v1207_v21, %v716_v27 }
 0x160   :  { %v679_v29 = vpop.f32.mrf.mxu3 }
 0x161   :  { %729 = vst [vmem:[#allocation8] sm:$0xff] %v725_v28  ;;  %v680_v18 = vadd.f32 %v1052_v17, %v679_v29 }
 0x163   :  { %v699_v31 = vadd.f32 %v698_v30, %v680_v18 }
 0x165   :  { %v718_v1 = vadd.f32 %v717_v32, %v699_v31 }
 0x167   :  { %v726_v33 = vadd.f32 %v1209_v22, %v718_v1 }
 0x168   :  { %v682_v34 = vpop.f32.mrf.mxu3 }
 0x169   :  { %730 = vst [vmem:[#allocation8 + $0x8] sm:$0xff] %v726_v33  ;;  %v683_v36 = vadd.f32 %v1052_v17, %v682_v34 }
 0x16b   :  { %v702_v38 = vadd.f32 %v701_v37, %v683_v36 }
 0x170   :  { %v684_v35 = vpop.f32.mrf.mxu3 }
 0x171   :  { %v685_v41 = vadd.f32 %v1052_v17, %v684_v35 }
 0x173   :  { %v704_v43 = vadd.f32 %v703_v42, %v685_v41 }
 0x178   :  { %v720_v39 = vpop.f32.mrf.mxu3 }
 0x179   :  { %v721_v40 = vadd.f32 %v720_v39, %v702_v38 }
 0x17b   :  { %v727_v21 = vadd.f32 %v1215_v25, %v721_v40 }
 0x17d   :  { %731 = vst [vmem:[#allocation8 + $0x10] sm:$0xff] %v727_v21 }
 0x180   :  { %v722_v22 = vpop.f32.mrf.mxu3 }
 0x181   :  { %v723_v44 = vadd.f32 %v722_v22, %v704_v43 }
 0x183   :  { %v728_v45 = vadd.f32 %v1212_v23, %v723_v44 }
 0x185   :  { %732 = vst [vmem:[#allocation8 + $0x18] sm:$0xff] %v728_v45 }
 0x186   :  { %745 = dma.vmem_to_hbm [thread:$0]  %s738_s10, 512, %s740_s13, [#allocation4], %s1162_s14, %s1162_s14, %s1163_s15  }
 0x187   :  { %1153 = dma.done.wait [#allocation4], 512  }
 0x188   :  { %1154 = vsyncadd [#allocation4], 4294966784 }
 0x189   :  { %750 = vsyncpa [#allocation3], 1 }
 0x18a   :  { %751 = vsyncpa [#allocation6], 1 }
 0x18b   :  { %752 = vsyncpa [#allocation4], 1 }

</bundles_post_ra>
